<compile_context>
chip_gen: v6e
topology: v6e:2x2x1
jax: 0.10.0
libtpu: 0.0.40
codegen_flags: <defaults>
</compile_context>

<pallas_src>
import functools

import jax
import jax.numpy as jnp
from jax.experimental import pallas as pl
from jax.experimental.pallas import tpu as pltpu


# ----------------------------------------------------------------------------
# Tile selection
# ----------------------------------------------------------------------------
def _pick_tiles(M, K, N, a_bytes, o_bytes, budget_bytes):
    """(tm, tn) for a (M,K)x(K,N) GEMM tile: largest tiles (tm | M, tn | N, tn a
    128 multiple when possible) whose double-buffered working set fits the VMEM
    budget.  The budget is chosen to be safe on v7x (64 MiB physical per TC) as
    well as v5e/v6e (128 MiB)."""
    tm_cands = [t for t in (1024, 512, 256, 128, 64, 32, 16, 8) if M % t == 0] or [M]
    tn_cands = [t for t in (2048, 1024, 512, 256, 128) if N % t == 0] or [N]

    def ws(tm, tn):
        # double-buffered A + W + O tiles, plus the bias row
        return 2 * (tm * K * a_bytes + K * tn * 2 + tm * tn * o_bytes) + 4 * tn

    fits = [(tm, tn) for tm in tm_cands for tn in tn_cands
            if ws(tm, tn) <= budget_bytes]
    if fits:
        return max(fits, key=lambda p: (p[0] * p[1], min(p)))
    return min(((tm, tn) for tm in tm_cands for tn in tn_cands),
               key=lambda p: ws(*p))


def _pick_rows_tile(M):
    """Row tile for the BN-stats reduction (prefer >= 2 grid steps)."""
    if M % 128 != 0:
        return M
    for t in (1024, 512, 256, 128):
        if M % t == 0 and M // t >= 2:
            return t
    return M


# ----------------------------------------------------------------------------
# Pallas kernels
# ----------------------------------------------------------------------------
def _bgemm_kernel(*refs, add_bias, activation):
    if add_bias:
        a_ref, w_ref, bias_ref, o_ref = refs
    else:
        a_ref, w_ref, o_ref = refs
    acc = jnp.dot(a_ref[...].astype(jnp.bfloat16), w_ref[...],
                  preferred_element_type=jnp.float32)
    if add_bias:
        acc = acc + bias_ref[...]
    if activation == "tanh":
        acc = jnp.tanh(acc)
    o_ref[...] = acc.astype(o_ref.dtype)


def pallas_bgemm(a, w, bias=None, activation=None, out_dtype=jnp.bfloat16,
                 budget_bytes=20 << 20):
    """Batched GEMM  (G, M, K) x (G, K, N) -> (G, M, N)  on the MXU.

    Grid (G, M-tiles, N-tiles), all parallel (no reduction axis: K is a full
    block).  A is cast to bf16 in-kernel, accumulation in f32; optional bias
    add and tanh run in the epilogue so the output never takes an extra
    elementwise round-trip through HBM."""
    G, M, K = a.shape
    Gw, Kw, N = w.shape
    assert G == Gw and K == Kw
    add_bias = bias is not None
    if add_bias:
        bias = jnp.broadcast_to(
            jnp.asarray(bias, jnp.float32).reshape(1, 1, N), (G, 1, N))

    # Pad the contraction dim to a 128 multiple for aligned MXU feed (only when
    # the padded A copy stays small; at production widths 8*Cin / 27*Cin are
    # already near-aligned).  TODO(synk): align to 256 on v6e/v7x per review.
    Kp = -(-K // 128) * 128
    if Kp != K and G * M * Kp * a.dtype.itemsize <= (64 << 20):
        a = jnp.pad(a, ((0, 0), (0, 0), (0, Kp - K)))
        w = jnp.pad(w, ((0, 0), (0, Kp - K), (0, 0)))
        K = Kp

    # Lane-dense output columns: pad N to a 128 multiple (and slice afterwards)
    # only while the padded store volume stays small; for large lane-sparse
    # outputs the extra HBM bytes would cost more than the masked stores.
    o_bytes = jnp.dtype(out_dtype).itemsize
    Np = -(-N // 128) * 128
    pad_n = (Np != N) and (G * M * Np * o_bytes <= (32 << 20))
    if pad_n:
        w = jnp.pad(w, ((0, 0), (0, 0), (0, Np - N)))
        if add_bias:
            bias = jnp.pad(bias, ((0, 0), (0, 0), (0, Np - N)))
    else:
        Np = N

    a_bytes = a.dtype.itemsize
    tm, tn = _pick_tiles(M, K, Np, a_bytes, o_bytes, budget_bytes)
    ws = 2 * (tm * K * a_bytes + K * tn * 2 + tm * tn * o_bytes) + 4 * tn
    vmem_limit = int(min(max(2 * ws, 32 << 20), 48 << 20))

    in_specs = [
        pl.BlockSpec((None, tm, K), lambda g, i, j: (g, i, 0)),
        pl.BlockSpec((None, K, tn), lambda g, i, j: (g, 0, j)),
    ]
    args = [a, w.astype(jnp.bfloat16)]
    if add_bias:
        in_specs.append(pl.BlockSpec((None, 1, tn), lambda g, i, j: (g, 0, j)))
        args.append(bias)

    kern = functools.partial(_bgemm_kernel, add_bias=add_bias,
                             activation=activation)
    out = pl.pallas_call(
        kern,
        out_shape=jax.ShapeDtypeStruct((G, M, Np), out_dtype),
        grid=(G, M // tm, Np // tn),
        in_specs=in_specs,
        out_specs=pl.BlockSpec((None, tm, tn), lambda g, i, j: (g, i, j)),
        compiler_params=pltpu.CompilerParams(
            dimension_semantics=("parallel", "parallel", "parallel"),
            vmem_limit_bytes=vmem_limit),
    )(*args)
    return out[:, :, :N] if pad_n else out


def _bn_stats_kernel(x_ref, gamma_ref, beta_ref, scale_ref, offset_ref,
                     sum_sc, sq_sc, *, nrows, eps):
    @pl.when(pl.program_id(0) == 0)
    def _():
        sum_sc[...] = jnp.zeros_like(sum_sc)
        sq_sc[...] = jnp.zeros_like(sq_sc)

    x = x_ref[...].astype(jnp.float32)
    sum_sc[...] += jnp.sum(x, axis=0, keepdims=True)
    sq_sc[...] += jnp.sum(x * x, axis=0, keepdims=True)

    @pl.when(pl.program_id(0) == pl.num_programs(0) - 1)
    def _():
        mean = sum_sc[...] / nrows
        # biased (train-mode) variance; E[x^2]-E[x]^2 in f32 is fine at these
        # sizes (see review correctness note).
        var = sq_sc[...] / nrows - mean * mean
        inv = jax.lax.rsqrt(var + eps)
        g = gamma_ref[...]
        scale_ref[...] = g * inv
        offset_ref[...] = beta_ref[...] - mean * g * inv


def bn_stats(x_rows, gamma, beta, eps=1e-5):
    """Per-channel (scale, offset) of train-mode BatchNorm over (rows, C) rows.

    The preceding conv/conv-transpose bias is a per-channel constant shift and
    cancels exactly under train-mode BN, so it never needs to be added."""
    M, C = x_rows.shape
    tm = _pick_rows_tile(M)
    kern = functools.partial(_bn_stats_kernel, nrows=float(M), eps=eps)
    return pl.pallas_call(
        kern,
        out_shape=(jax.ShapeDtypeStruct((1, C), jnp.float32),
                   jax.ShapeDtypeStruct((1, C), jnp.float32)),
        grid=(M // tm,),
        in_specs=[
            pl.BlockSpec((tm, C), lambda i: (i, 0)),
            pl.BlockSpec((1, C), lambda i: (0, 0)),
            pl.BlockSpec((1, C), lambda i: (0, 0)),
        ],
        out_specs=(pl.BlockSpec((1, C), lambda i: (0, 0)),
                   pl.BlockSpec((1, C), lambda i: (0, 0))),
        scratch_shapes=[pltpu.VMEM((1, C), jnp.float32),
                        pltpu.VMEM((1, C), jnp.float32)],
        compiler_params=pltpu.CompilerParams(
            dimension_semantics=("arbitrary",)),
    )(x_rows,
      gamma.reshape(1, C).astype(jnp.float32),
      beta.reshape(1, C).astype(jnp.float32))


# ----------------------------------------------------------------------------
# XLA glue: BN+ReLU fold, sub-pixel conv-transpose, im2col for Conv3d
# ----------------------------------------------------------------------------
def _apply_bn_relu(act_rows, scale, offset):
    """BN(train stats)+ReLU affine, folded by XLA into the consumer's
    pad/slice/concat producers (so the spatial zero padding added afterwards is
    correctly in the *normalized* space).  f32 math, bf16 result."""
    return jnp.maximum(act_rows.astype(jnp.float32) * scale + offset,
                       0.0).astype(jnp.bfloat16)


def first_convt_fc(z_rows, Wt):
    """Layer 1: ConvTranspose3d(nz->C, K=4, stride=1, pad=0) on a 1x1x1 input
    degenerates to a fully-connected GEMM; bias skipped (cancelled by BN)."""
    nz, Cout, K = Wt.shape[0], Wt.shape[1], Wt.shape[2]
    Wmat = Wt.transpose(0, 2, 3, 4, 1).reshape(nz, K ** 3 * Cout)
    y = pallas_bgemm(z_rows[None], Wmat[None], out_dtype=jnp.bfloat16)[0]
    return y.reshape(-1, Cout), (K, K, K)


def conv_transpose3d_s2(act_rows, batch, spatial, Wt, bias=None,
                        apply_tanh=False, out_dtype=jnp.bfloat16):
    """PyTorch ConvTranspose3d(K=4, stride=2, padding=1) via the sub-pixel
    decomposition: the output splits into 8 parity sub-grids, each a standard
    2x2x2 stride-1 conv over the zero-padded input -> one batched (G=8) Pallas
    GEMM with contraction 8*Cin, writing final-size activations directly."""
    Cin, Cout, K = Wt.shape[0], Wt.shape[1], Wt.shape[2]
    assert K == 4
    D, H, W = spatial
    x = act_rows.reshape(batch, D, H, W, Cin)
    xp = jnp.pad(x, ((0, 0), (1, 1), (1, 1), (1, 1), (0, 0)))

    patches, wmats = [], []
    for qd in (0, 1):
        for qh in (0, 1):
            for qw in (0, 1):
                slabs, taps = [], []
                for jd in (0, 1):
                    for jh in (0, 1):
                        for jw in (0, 1):
                            od, oh, ow = qd + jd, qh + jh, qw + jw
                            slabs.append(xp[:, od:od + D, oh:oh + H,
                                            ow:ow + W, :])
                            # output (2t+q) pulls input at padded offset q+j
                            # against kernel tap 3 - q - 2j  (per axis)
                            taps.append(Wt[:, :,
                                           3 - qd - 2 * jd,
                                           3 - qh - 2 * jh,
                                           3 - qw - 2 * jw])
                patches.append(jnp.concatenate(slabs, axis=-1)
                               .reshape(batch * D * H * W, 8 * Cin))
                wmats.append(jnp.concatenate(taps, axis=0))       # (8*Cin, Cout)

    A = jnp.stack(patches, axis=0)                                # (8, rows, 8*Cin)
    Wg = jnp.stack(wmats, axis=0)                                 # (8, 8*Cin, Cout)
    y = pallas_bgemm(A, Wg, bias=bias,
                     activation="tanh" if apply_tanh else None,
                     out_dtype=out_dtype)                         # (8, rows, Cout)
    y = y.reshape(2, 2, 2, batch, D, H, W, Cout)
    # interleave parity sub-grids: out[b, 2d+qd, 2h+qh, 2w+qw, c]
    out = y.transpose(3, 4, 0, 5, 1, 6, 2, 7).reshape(
        batch, 2 * D, 2 * H, 2 * W, Cout)
    return out


def conv3d(act_rows, batch, spatial, Wc, b, stride, padding):
    """PyTorch Conv3d (stride 1 here): channel-last bf16 im2col + Pallas GEMM."""
    assert stride == 1
    D, H, W = spatial
    Cout, Cin, K = Wc.shape[0], Wc.shape[1], Wc.shape[2]
    OD = D + 2 * padding - K + 1
    OH = H + 2 * padding - K + 1
    OW = W + 2 * padding - K + 1
    x = act_rows.reshape(batch, D, H, W, Cin)
    xp = jnp.pad(x, ((0, 0), (padding, padding), (padding, padding),
                     (padding, padding), (0, 0)))
    slabs = [xp[:, kd:kd + OD, kh:kh + OH, kw:kw + OW, :]
             for kd in range(K) for kh in range(K) for kw in range(K)]
    patches = jnp.concatenate(slabs, axis=-1).reshape(
        batch * OD * OH * OW, K ** 3 * Cin)
    Wmat = Wc.transpose(2, 3, 4, 1, 0).reshape(K ** 3 * Cin, Cout)
    y = pallas_bgemm(patches[None], Wmat[None], bias=b,
                     out_dtype=jnp.bfloat16)[0]
    return y, (OD, OH, OW)


# ----------------------------------------------------------------------------
# Parameter construction mirroring WGAN3D_G.__init__
# ----------------------------------------------------------------------------
def _init_convT(key, cin, cout, k):
    kw, kb = jax.random.split(key)
    W = 0.05 * jax.random.normal(kw, (cin, cout, k, k, k), jnp.float32)
    b = 0.05 * jax.random.normal(kb, (cout,), jnp.float32)
    return W, b


def _init_conv(key, cout, cin, k):
    kw, kb = jax.random.split(key)
    W = 0.05 * jax.random.normal(kw, (cout, cin, k, k, k), jnp.float32)
    b = 0.05 * jax.random.normal(kb, (cout,), jnp.float32)
    return W, b


def _init_bn(key, c):
    kg, kb = jax.random.split(key)
    gamma = 1.0 + 0.1 * jax.random.normal(kg, (c,), jnp.float32)
    beta = 0.1 * jax.random.normal(kb, (c,), jnp.float32)
    return gamma, beta


def build_params(key, isize, nz, nc, ngf, n_extra_layers=0):
    assert isize % 16 == 0, "isize has to be a multiple of 16"
    cngf, tisize = ngf // 2, 4
    while tisize != isize:
        cngf *= 2
        tisize *= 2
    keys = iter(jax.random.split(key, 64))
    layers = []
    layers.append(("convt", *_init_convT(next(keys), nz, cngf, 4), 1, 0))
    layers.append(("bnrelu", *_init_bn(next(keys), cngf)))
    csize = 4
    while csize < isize // 2:
        layers.append(("convt", *_init_convT(next(keys), cngf, cngf // 2, 4), 2, 1))
        layers.append(("bnrelu", *_init_bn(next(keys), cngf // 2)))
        cngf //= 2
        csize *= 2
    for _ in range(n_extra_layers):
        layers.append(("conv", *_init_conv(next(keys), cngf, cngf, 3), 1, 1))
        layers.append(("bnrelu", *_init_bn(next(keys), cngf)))
    layers.append(("convt_tanh", *_init_convT(next(keys), cngf, nc, 4), 2, 1))
    return layers


# ----------------------------------------------------------------------------
# Forward pass (channel-last bf16 rows between layers)
# ----------------------------------------------------------------------------
def wgan3d_g_forward(x, layers):
    B, nz = x.shape[0], x.shape[1]
    act = x.reshape(B, nz).astype(jnp.float32)       # NCDHW (B,nz,1,1,1) -> (B,nz)
    spatial = (1, 1, 1)
    pending = None                                    # (scale, offset) of prev BN
    out_nhwc = None

    for idx, layer in enumerate(layers):
        kind = layer[0]

        if kind == "bnrelu":
            _, gamma, beta = layer
            pending = bn_stats(act, gamma, beta)
            continue

        # fold the previous BatchNorm+ReLU into the consumer's input build
        if pending is not None:
            act = _apply_bn_relu(act, *pending)
            pending = None

        if kind == "convt":
            _, Wt, b, s, p = layer
            # conv-transpose bias is exactly cancelled by the following
            # train-mode BatchNorm (per-channel constant shift), so skip it.
            assert idx + 1 < len(layers) and layers[idx + 1][0] == "bnrelu"
            if spatial == (1, 1, 1):
                assert s == 1 and p == 0
                act, spatial = first_convt_fc(act, Wt)
            else:
                assert s == 2 and p == 1
                out = conv_transpose3d_s2(act, B, spatial, Wt)
                spatial = tuple(2 * d for d in spatial)
                act = out.reshape(-1, Wt.shape[1])
            continue

        if kind == "conv":
            _, Wc, bc, s, p = layer
            act, spatial = conv3d(act, B, spatial, Wc, bc, s, p)
            continue

        if kind == "convt_tanh":
            _, Wt, b, s, p = layer
            assert s == 2 and p == 1
            out_nhwc = conv_transpose3d_s2(act, B, spatial, Wt, bias=b,
                                           apply_tanh=True,
                                           out_dtype=jnp.float32)
            spatial = tuple(2 * d for d in spatial)
            continue

        raise ValueError(kind)

    # module boundary: channel-last -> NCDHW
    return out_nhwc.transpose(0, 4, 1, 2, 3)


# ----------------------------------------------------------------------------
# Pure-JAX reference for the sub-pixel transposed conv (self-check only)
# ----------------------------------------------------------------------------
def _ref_conv_transpose3d_s2(x_nhwc, Wt):
    B, D, H, W, Cin = x_nhwc.shape
    Cout, K = Wt.shape[1], Wt.shape[2]
    full = jnp.zeros((B, 2 * D + K - 2, 2 * H + K - 2, 2 * W + K - 2, Cout),
                     jnp.float32)
    for kd in range(K):
        for kh in range(K):
            for kw in range(K):
                contrib = jnp.einsum('bdhwc,co->bdhwo', x_nhwc,
                                     Wt[:, :, kd, kh, kw])
                full = full.at[:, kd:kd + 2 * (D - 1) + 1:2,
                               kh:kh + 2 * (H - 1) + 1:2,
                               kw:kw + 2 * (W - 1) + 1:2, :].add(contrib)
    return full[:, 1:1 + 2 * D, 1:1 + 2 * H, 1:1 + 2 * W, :]


if __name__ == "__main__":
    key = jax.random.PRNGKey(0)

    # --- self-check: sub-pixel ConvTranspose3d(K=4, s=2, p=1) vs direct ref ---
    kchk_x, kchk_w, key = jax.random.split(key, 3)
    xc = jax.random.normal(kchk_x, (1, 3, 3, 3, 5), jnp.float32).astype(jnp.bfloat16)
    Wc_t = 0.05 * jax.random.normal(kchk_w, (5, 6, 4, 4, 4), jnp.float32)

    def _check(xb):
        out = conv_transpose3d_s2(xb.reshape(-1, 5), 1, (3, 3, 3), Wc_t,
                                  out_dtype=jnp.float32)
        ref = _ref_conv_transpose3d_s2(xb.astype(jnp.float32), Wc_t)
        return jnp.max(jnp.abs(out - ref))

    err = float(jax.block_until_ready(jax.jit(_check)(xc)))
    assert err < 2e-2, f"sub-pixel convT mismatch: {err}"

    # --- full generator forward at small shapes ---
    # isize=16 (min allowed), latent nz=8, 1 output channel, ngf=4.
    isize, nz, nc, ngf, B = 16, 8, 1, 4, 2
    n_extra_layers = 1

    kparams, kin = jax.random.split(key)
    layers = build_params(kparams, isize, nz, nc, ngf, n_extra_layers)

    x = jax.random.normal(kin, (B, nz, 1, 1, 1), jnp.float32)

    fwd = jax.jit(lambda inp: wgan3d_g_forward(inp, layers))
    out = jax.block_until_ready(fwd(x))

    assert out.shape == (B, nc, isize, isize, isize), out.shape
    assert bool(jnp.all(jnp.isfinite(out)))
    assert bool(jnp.all(jnp.abs(out) <= 1.0 + 1e-6))  # tanh range
    print("KERNEL_OK")
</pallas_src>

<mosaic_0001>
module attributes {stable_mosaic.version = 11 : i64} {
  func.func @_bgemm_kernel(%arg0: i32, %arg1: i32, %arg2: i32, %arg3: memref<1x27x128xbf16, #tpu.memory_space<vmem>>, %arg4: memref<1x128x128xbf16, #tpu.memory_space<vmem>>, %arg5: memref<1x27x128xf32, #tpu.memory_space<vmem>>) attributes {dimension_semantics = [#tpu.dimension_semantics<parallel>, #tpu.dimension_semantics<parallel>, #tpu.dimension_semantics<parallel>], iteration_bounds = array<i64: 8, 1, 1>, scalar_prefetch = 0 : i64, scratch_operands = 0 : i64, tpu.core_type = #tpu.core_type<tc>, window_params = [{transform_indices = @transform_0, window_bounds = array<i64: 1, 27, 128>}, {transform_indices = @transform_1, window_bounds = array<i64: 1, 128, 128>}, {transform_indices = @transform_2, window_bounds = array<i64: 1, 27, 128>}]} {
    %c0 = arith.constant 0 : index
    %c0_0 = arith.constant 0 : index
    %c0_1 = arith.constant 0 : index
    %0 = vector.load %arg3[%c0, %c0_0, %c0_1] : memref<1x27x128xbf16, #tpu.memory_space<vmem>>, vector<1x27x128xbf16>
    %1 = vector.shape_cast %0 : vector<1x27x128xbf16> to vector<27x128xbf16>
    %c0_2 = arith.constant 0 : index
    %c0_3 = arith.constant 0 : index
    %c0_4 = arith.constant 0 : index
    %2 = vector.load %arg4[%c0_2, %c0_3, %c0_4] : memref<1x128x128xbf16, #tpu.memory_space<vmem>>, vector<1x128x128xbf16>
    %3 = vector.shape_cast %2 : vector<1x128x128xbf16> to vector<128x128xbf16>
    %cst = arith.constant dense<0.000000e+00> : vector<27x128xf32>
    %4 = tpu.matmul %1, %3, %cst {dimension_numbers = #tpu.dot_dimension_numbers<[1], [0], [0], [1], [0, 0, 1, 1], [], []>} : vector<27x128xbf16>, vector<128x128xbf16>, vector<27x128xf32> -> vector<27x128xf32>
    %c0_5 = arith.constant 0 : index
    %c0_6 = arith.constant 0 : index
    %c0_7 = arith.constant 0 : index
    %5 = vector.load %arg5[%c0_5, %c0_6, %c0_7] : memref<1x27x128xf32, #tpu.memory_space<vmem>>, vector<1x27x128xf32>
    %6 = vector.shape_cast %5 : vector<1x27x128xf32> to vector<27x128xf32>
    %7 = vector.shape_cast %4 : vector<27x128xf32> to vector<1x27x128xf32>
    tpu.vector_store %arg5[%c0_5, %c0_6, %c0_7], %7 {strides = array<i32>} : memref<1x27x128xf32, #tpu.memory_space<vmem>>, vector<1x27x128xf32>,
    return
  }
  func.func @transform_0(%arg0: i32, %arg1: i32, %arg2: i32) -> (i32, i32, i32) {
    %c0_i32 = arith.constant 0 : i32
    %c0_i32_0 = arith.constant 0 : i32
    return %arg0, %arg1, %c0_i32 : i32, i32, i32
  }
  func.func @transform_1(%arg0: i32, %arg1: i32, %arg2: i32) -> (i32, i32, i32) {
    %c0_i32 = arith.constant 0 : i32
    %c0_i32_0 = arith.constant 0 : i32
    return %arg0, %c0_i32, %arg2 : i32, i32, i32
  }
  func.func @transform_2(%arg0: i32, %arg1: i32, %arg2: i32) -> (i32, i32, i32) {
    %c0_i32 = arith.constant 0 : i32
    return %arg0, %arg1, %arg2 : i32, i32, i32
  }
}

</mosaic_0001>

<bundles_post_ra>
// kernel: _check.1
= control target key start
LH: loop header
LB: loop body
LE: loop exit
PB: predicated region body
PF: predicated region fallthrough
CT: control target
= control target key end

     0   :  { %s610_s9 = smov 0   ;;  %s612_s10 = smov 0   ;;  %s651_s0 = inlined_call_operand.vmem [shape: bf16[8,27,128], index: 0, kind: input, shape index: {}]   ;;  %s652_s1 = inlined_call_operand.vmem [shape: bf16[8,128,128], index: 1, kind: input, shape index: {}]   ;;  %s653_s2 = inlined_call_operand.vmem [shape: f32[8,27,128], index: 2, kind: output, shape index: {}]  }
   0x1   :  { %s614_s11 = smov 0  }
   0x2 LB: > { %s31_s12 = sadd.s32 1, %s589_s10  ;;  %p485_p0 = scmp.ge.s32.totalorder %s593_s11, 1  ;;  %s593_s11 = sphi %s614_s11, %s12_s11   ;;  %s589_s10 = sphi %s612_s10, %s655_s10   ;;  %s585_s9 = sphi %s610_s9, %s654_s9  }
   0x3   : > { %p33_p1 = scmp.ge.s32.totalorder %s31_s12, 8  ;;  %p157_p2 = scmp.lt.s32.totalorder %s593_s11, 9 }
   0x5   : > { %s657_s12 = smov (%p33_p1, %s31_s12), 0  ;;  %p158_p3 = pnand %p485_p0, %p157_p2 }
   0x6   : > { %p199_p4 = scmp.lt.s32.totalorder (!%p158_p3), %s585_s9, 7 }
   0x7   : > { %161 = sbr.rel (%p158_p3) target bundleno = 248 (0xf8), region = 28 }
   0xc   : > { %s659_s9 = smov (!%p199_p4, %s585_s9), 7 }
   0xd   : > { %s505_s13 = sshll.u32 %s659_s9, 6  ;;  %s504_s17 = sshll.u32 %s659_s9, 4 }
   0xe   : > { %s215_s16 = scalar_lea.vmem %s652_s1, %s505_s13  ;;  %s206_s20 = scalar_lea.vmem %s651_s0, %s504_s17 }
   0xf   : > { %v561_v0 = vld [vmem:[%s215_s16 + $0x38] sm:$0xff]   ;;  %v562_v1 = vld [vmem:[%s215_s16 + $0x30] sm:$0xff]   ;;  %v563_v2 = vld [vmem:[%s215_s16 + $0x28] sm:$0xff]   ;;  %s506_s21 = sshll.u32 %s659_s9, 5 }
  0x10   : > { %517 = vmatprep.subr.bf16.mxu0 %v561_v0  ;;  %v564_v3 = vld [vmem:[%s215_s16 + $0x20] sm:$0xff]   ;;  %v565_v5 = vld [vmem:[%s215_s16 + $0x18] sm:$0xff]   ;;  %v566_v6 = vld [vmem:[%s215_s16 + $0x10] sm:$0xff]   ;;  %s227_s24 = scalar_lea.vmem %s653_s2, %s506_s21 }
  0x11   : > { %518 = vmatpush3.bf16.msra.mxu0 %v561_v0  ;;  %v569_v4 = vld [vmem:[%s206_s20] sm:$0xff]   ;;  %v567_v7 = vld [vmem:[%s215_s16 + $0x8] sm:$0xff]  }
  0x12   : > { %519 = vmatprep.subr.bf16.mxu0 %v562_v1  ;;  %533 = vmatprep.mubr.bf16.mxu0 %v569_v4  ;;  %v568_v8 = vld [vmem:[%s215_s16] sm:$0xff]   ;;  %v570_v9 = vld [vmem:[%s206_s20 + $0x8] sm:$0x3f]  }
  0x15   : > { %520 = vmatpush3.bf16.msra.mxu0 %v562_v1 }
  0x16   : > { %521 = vmatprep.subr.bf16.mxu0 %v563_v2 }
  0x19   : > { %522 = vmatpush3.bf16.msra.mxu0 %v563_v2 }
  0x1a   : > { %523 = vmatprep.subr.bf16.mxu0 %v564_v3 }
  0x1d   : > { %524 = vmatpush3.bf16.msra.mxu0 %v564_v3 }
  0x1e   : > { %525 = vmatprep.subr.bf16.mxu0 %v565_v5 }
  0x21   : > { %526 = vmatpush3.bf16.msra.mxu0 %v565_v5 }
  0x22   : > { %527 = vmatprep.subr.bf16.mxu0 %v566_v6 }
  0x25   : > { %528 = vmatpush3.bf16.msra.mxu0 %v566_v6 }
  0x26   : > { %529 = vmatprep.subr.bf16.mxu0 %v567_v7 }
  0x29   : > { %530 = vmatpush3.bf16.msra.mxu0 %v567_v7 }
  0x2a   : > { %531 = vmatprep.subr.bf16.mxu0 %v568_v8 }
  0x2d   : > { %532 = vmatpush3.bf16.msra.mxu0 %v568_v8 }
  0x30   : > { %534 = vmatmul.mubr.bf16.vlgmr.msra.gmra.mxu0 %v570_v9 }
  0xf0   : > { %v535_v10 = vpop.f32.mrf.mxu0 }
  0xf1   : > { %361 = vst [vmem:[%s227_s24 + $0x10] sm:$0xff] %v535_v10 }
  0xf2   : > { %v344_v11 = vpop.f32.mrf.mxu0 }
  0xf3   : > { %359 = vst [vmem:[%s227_s24] sm:$0xff] %v344_v11 }
  0xf4   : > { %v536_v12 = vpop.f32.mrf.mxu0 }
  0xf5   : > { %362 = vst [vmem:[%s227_s24 + $0x18] sm:$0x7] %v536_v12 }
  0xf6   : > { %v347_v13 = vpop.f32.mrf.mxu0 }
  0xf7   : > { %360 = vst [vmem:[%s227_s24 + $0x8] sm:$0xff] %v347_v13 }
  0xf8 PF: > { %s12_s11 = sadd.s32 1, %s593_s11   ;;  %s654_s9 = smov %s589_s10 }
  0xf9   : > { %p9_p5 = scmp.ge.s32.totalorder %s12_s11, 10   ;;  %s655_s10 = smov %s657_s12 }
  0xfb   :  { %11 = sbr.rel (!%p9_p5) target bundleno = 2 (0x2), region = 61 }

</bundles_post_ra>
